<compile_context>
chip_gen: v6e
topology: v6e:2x2x1
jax: 0.10.0
libtpu: 0.0.40
codegen_flags: <defaults>
</compile_context>

<pallas_src>
import functools

import jax
import jax.numpy as jnp
from jax import lax
from jax.experimental import pallas as pl
from jax.experimental.pallas import tpu as pltpu


# ----------------------------- configuration -------------------------------
DOF = 4            # actions_num
NUM_SEQS = 8       # num_seqs (batch)
NUM_RBFS = 8       # numRBFs
DT_BASE = 0.05     # params['dt']
CTRL_FREQ_INV = 2  # params['controlFrequencyInv']
STEPS_PER_SEQ = 8  # params['steps']
WEIGHT_SCALE = 0.1
HYPER_SCALE = 10.0
OPT_HYPERPARAMS = True
TARGET_CROSSING = False

DT = DT_BASE * CTRL_FREQ_INV
TAU = DT * STEPS_PER_SEQ
NUM_OPT_PARAMS = DOF * (int(OPT_HYPERPARAMS) + int(TARGET_CROSSING))
NUM_INPUT_PARAMS = DOF * (NUM_RBFS + 1) + NUM_OPT_PARAMS


# ------------------------------- kernel ------------------------------------
def dmp_kernel(w_ref, s_ref, out_ref, *, dt, tau, hyp_scale, weight_scale,
               num_rbfs):
    """One DMP evaluation step for all sequences / DOFs.

    w_ref   : (B, dof, N)  raw (unscaled) DMP weights
    s_ref   : (6, B, dof)  packed state: [g, hyper_raw, y0, y, dy, step]
    out_ref : (B, dof)     next position y_{t+1}
    """
    n = num_rbfs

    # Packed state slab: static leading-axis indexing (no lane-offset slicing).
    g = s_ref[0]      # goal                                (B, dof)
    hz = s_ref[1]     # raw hyper-parameters (pre-ELU)      (B, dof)
    y0 = s_ref[2]     # start position                      (B, dof)
    y = s_ref[3]      # current position                    (B, dof)
    dy = s_ref[4]     # current velocity                    (B, dof)
    stp = s_ref[5]    # current step, broadcast over dof    (B, dof)

    # ELU(hz) * hyperparameter_scale + 2  (optimize_hyperparameters branch).
    # min() keeps the unselected exp branch finite for large positive hz;
    # selected values are unchanged.
    elu = jnp.where(hz > 0.0, hz, jnp.exp(jnp.minimum(hz, 0.0)) - 1.0)
    alpha_z = elu * hyp_scale + 2.0
    alpha_x = alpha_z / 3.0
    beta = alpha_z / 4.0

    # Phase variable x = exp(-alpha_x / tau * t),  t = step * dt.
    t = stp * dt
    x = jnp.exp(-alpha_x / tau * t)                             # (B, dof)

    # temp_spacing = linspace(0, 1, N), generated in-kernel from one iota.
    lane_i = lax.broadcasted_iota(jnp.int32, (1, 1, n), 2)
    lane_f = lane_i.astype(jnp.float32)
    delta = 1.0 / (n - 1)
    ts = lane_f * delta                                         # (1, 1, n)
    # "Right endpoint" spacing sb[i] = ts[min(i+1, n-1)].
    sb = jnp.minimum(lane_f + 1.0, float(n - 1)) * delta        # (1, 1, n)

    ax3 = alpha_x[:, :, None]                                   # (B, dof, 1)
    c = jnp.exp(-ax3 * ts)                                      # centers   (B, dof, n)
    c_b = jnp.exp(-ax3 * sb)                                    # shifted centers

    # Left endpoints c_a equal c except the last lane, which repeats c[n-2];
    # extract that element with a masked lane reduction (XLU) instead of a
    # third exp pass, so h[i] = 1/(c[i+1]-c[i])^2 with h[n-1] = h[n-2] stays
    # bit-identical to the reference.
    c_nm2 = jnp.sum(jnp.where(lane_i == n - 2, c, 0.0), axis=2, keepdims=True)
    c_a = jnp.where(lane_i == n - 1, c_nm2, c)
    diff = c_b - c_a
    # NOTE: alpha_x == 0 makes diff == 0 -> h = inf, exactly like the PyTorch
    # module; the degenerate case is inherited, not hidden.
    h = 1.0 / (diff * diff)

    # Gaussian RBF evaluation and the weighted forcing term.
    err = x[:, :, None] - c
    at_x = jnp.exp(-h * (err * err))                            # rbf(h, sq_error)
    fraction = jnp.sum(w_ref[...] * at_x, axis=2) * weight_scale
    forcing = fraction / jnp.sum(at_x, axis=2) * x              # (B, dof)

    # DMP integration step (target_crossing == False branch).
    inner = beta * (g - y) - tau * dy
    dz = alpha_z * inner + (g - y0) * forcing
    out_ref[...] = y + (dy + dz * dt / (tau * tau)) * dt


# ------------------------------- wrapper ------------------------------------
@jax.jit
def dmp_forward(parameters, y0, y, dy, step):
    """Mirrors DMP.forward(parameters, y0, y, dy, step) -> next position."""
    B = parameters.shape[0]
    dof, n = DOF, NUM_OPT_PARAMS

    # initialize() glue: slice the flat parameter vector.  This is wrapper-side
    # layout plumbing only - weight_scale and the ELU are applied in-kernel.
    w_raw = parameters[:, : -dof - n].reshape(B, DOF, NUM_RBFS).astype(jnp.float32)
    g = parameters[:, -dof - n: -n].astype(jnp.float32)
    hz = parameters[:, -dof:].astype(jnp.float32)

    step_b = jnp.broadcast_to(step.reshape(B, 1).astype(jnp.float32), (B, DOF))
    # One packed (6, B, dof) slab -> a single input DMA instead of seven.
    state = jnp.stack(
        [g, hz, y0.astype(jnp.float32), y.astype(jnp.float32),
         dy.astype(jnp.float32), step_b], axis=0)

    kernel = functools.partial(
        dmp_kernel, dt=DT, tau=TAU, hyp_scale=HYPER_SCALE,
        weight_scale=WEIGHT_SCALE, num_rbfs=NUM_RBFS)

    vmem = pltpu.MemorySpace.VMEM
    # No grid: a single invocation, whole arrays resident in VMEM (nothing to
    # pipeline for this tiny problem -> no per-step prologue/epilogue cost).
    return pl.pallas_call(
        kernel,
        out_shape=jax.ShapeDtypeStruct((B, DOF), jnp.float32),
        in_specs=[pl.BlockSpec(memory_space=vmem),   # raw weights (B, dof, N)
                  pl.BlockSpec(memory_space=vmem)],  # packed state (6, B, dof)
        out_specs=pl.BlockSpec(memory_space=vmem),
    )(w_raw, state)


# ----------------------------- pure-JAX reference ---------------------------
def dmp_reference(parameters, y0, y, dy, step):
    B = parameters.shape[0]
    dof, n = DOF, NUM_OPT_PARAMS
    weights = (parameters[:, : -dof - n] * WEIGHT_SCALE).reshape(B, dof, NUM_RBFS)
    g = parameters[:, -dof - n: -n]
    hz = parameters[:, -dof:]
    alpha_z = jnp.where(hz > 0, hz, jnp.exp(hz) - 1.0) * HYPER_SCALE + 2.0
    alpha_x = alpha_z / 3.0
    beta = alpha_z / 4.0
    ts = jnp.linspace(0.0, 1.0, NUM_RBFS, dtype=jnp.float32)
    c = jnp.exp(-alpha_x[:, :, None] * ts)
    h = 1.0 / (c[..., 1:] - c[..., :-1]) ** 2
    h = jnp.concatenate([h, h[..., -1:]], axis=-1)
    t = step[:, None] * DT
    x = jnp.exp(-alpha_x / TAU * t)
    sq_error = (x[..., None] - c) ** 2
    at_x = jnp.exp(-h * sq_error)
    fraction = jnp.sum(weights * at_x, axis=-1)
    forcing = fraction / at_x.sum(-1) * x
    inner = beta * (g - y) - TAU * dy
    dz = alpha_z * inner + (g - y0) * forcing
    return y + (dy + dz * DT / TAU ** 2) * DT


# --------------------------------- main --------------------------------------
if __name__ == "__main__":
    key = jax.random.PRNGKey(0)
    k1, k2, k3, k4, k5 = jax.random.split(key, 5)

    parameters = jax.random.normal(k1, (NUM_SEQS, NUM_INPUT_PARAMS), jnp.float32)
    y0 = jax.random.normal(k2, (NUM_SEQS, DOF), jnp.float32)
    y = jax.random.normal(k3, (NUM_SEQS, DOF), jnp.float32)
    dy = jax.random.normal(k4, (NUM_SEQS, DOF), jnp.float32)
    step = jax.random.randint(k5, (NUM_SEQS,), 0, STEPS_PER_SEQ).astype(jnp.float32)

    out = dmp_forward(parameters, y0, y, dy, step)
    out = jax.block_until_ready(out)

    ref = dmp_reference(parameters, y0, y, dy, step)
    assert jnp.allclose(out, ref, rtol=1e-5, atol=1e-5), (out, ref)

    print("KERNEL_OK")
</pallas_src>

<mosaic_0001>
module attributes {stable_mosaic.version = 11 : i64} {
  func.func @dmp_kernel(%arg0: memref<8x4x8xf32, #tpu.memory_space<vmem>>, %arg1: memref<6x8x4xf32, #tpu.memory_space<vmem>>, %arg2: memref<8x4xf32, #tpu.memory_space<vmem>>) attributes {dimension_semantics = [], scalar_prefetch = 0 : i64, scratch_operands = 0 : i64, tpu.core_type = #tpu.core_type<tc>} {
    %c0 = arith.constant 0 : index
    %c0_0 = arith.constant 0 : index
    %c0_1 = arith.constant 0 : index
    %0 = vector.load %arg1[%c0, %c0_0, %c0_1] : memref<6x8x4xf32, #tpu.memory_space<vmem>>, vector<1x8x4xf32>
    %1 = vector.shape_cast %0 : vector<1x8x4xf32> to vector<8x4xf32>
    %c1 = arith.constant 1 : index
    %c0_2 = arith.constant 0 : index
    %c0_3 = arith.constant 0 : index
    %2 = vector.load %arg1[%c1, %c0_2, %c0_3] : memref<6x8x4xf32, #tpu.memory_space<vmem>>, vector<1x8x4xf32>
    %3 = vector.shape_cast %2 : vector<1x8x4xf32> to vector<8x4xf32>
    %c2 = arith.constant 2 : index
    %c0_4 = arith.constant 0 : index
    %c0_5 = arith.constant 0 : index
    %4 = vector.load %arg1[%c2, %c0_4, %c0_5] : memref<6x8x4xf32, #tpu.memory_space<vmem>>, vector<1x8x4xf32>
    %5 = vector.shape_cast %4 : vector<1x8x4xf32> to vector<8x4xf32>
    %c3 = arith.constant 3 : index
    %c0_6 = arith.constant 0 : index
    %c0_7 = arith.constant 0 : index
    %6 = vector.load %arg1[%c3, %c0_6, %c0_7] : memref<6x8x4xf32, #tpu.memory_space<vmem>>, vector<1x8x4xf32>
    %7 = vector.shape_cast %6 : vector<1x8x4xf32> to vector<8x4xf32>
    %c4 = arith.constant 4 : index
    %c0_8 = arith.constant 0 : index
    %c0_9 = arith.constant 0 : index
    %8 = vector.load %arg1[%c4, %c0_8, %c0_9] : memref<6x8x4xf32, #tpu.memory_space<vmem>>, vector<1x8x4xf32>
    %9 = vector.shape_cast %8 : vector<1x8x4xf32> to vector<8x4xf32>
    %c5 = arith.constant 5 : index
    %c0_10 = arith.constant 0 : index
    %c0_11 = arith.constant 0 : index
    %10 = vector.load %arg1[%c5, %c0_10, %c0_11] : memref<6x8x4xf32, #tpu.memory_space<vmem>>, vector<1x8x4xf32>
    %11 = vector.shape_cast %10 : vector<1x8x4xf32> to vector<8x4xf32>
    %cst = arith.constant 0.000000e+00 : f32
    %12 = vector.broadcast %cst : f32 to vector<8x4xf32>
    %13 = arith.cmpf ogt, %3, %12 : vector<8x4xf32>
    %cst_12 = arith.constant 0.000000e+00 : f32
    %14 = vector.broadcast %cst_12 : f32 to vector<8x4xf32>
    %15 = arith.minimumf %3, %14 : vector<8x4xf32>
    %16 = math.exp %15 : vector<8x4xf32>
    %cst_13 = arith.constant 1.000000e+00 : f32
    %17 = vector.broadcast %cst_13 : f32 to vector<8x4xf32>
    %18 = arith.subf %16, %17 : vector<8x4xf32>
    %19 = arith.select %13, %3, %18 : vector<8x4xi1>, vector<8x4xf32>
    %cst_14 = arith.constant 1.000000e+01 : f32
    %20 = vector.broadcast %cst_14 : f32 to vector<8x4xf32>
    %21 = arith.mulf %19, %20 : vector<8x4xf32>
    %cst_15 = arith.constant 2.000000e+00 : f32
    %22 = vector.broadcast %cst_15 : f32 to vector<8x4xf32>
    %23 = arith.addf %21, %22 : vector<8x4xf32>
    %cst_16 = arith.constant 3.000000e+00 : f32
    %24 = vector.broadcast %cst_16 : f32 to vector<8x4xf32>
    %25 = arith.divf %23, %24 : vector<8x4xf32>
    %cst_17 = arith.constant 4.000000e+00 : f32
    %26 = vector.broadcast %cst_17 : f32 to vector<8x4xf32>
    %27 = arith.divf %23, %26 : vector<8x4xf32>
    %cst_18 = arith.constant 1.000000e-01 : f32
    %28 = vector.broadcast %cst_18 : f32 to vector<8x4xf32>
    %29 = arith.mulf %11, %28 : vector<8x4xf32>
    %cst_19 = arith.constant 0.000000e+00 : f32
    %30 = vector.broadcast %cst_19 : f32 to vector<8x4xf32>
    %31 = arith.subf %30, %25 : vector<8x4xf32>
    %cst_20 = arith.constant 8.000000e-01 : f32
    %32 = vector.broadcast %cst_20 : f32 to vector<8x4xf32>
    %33 = arith.divf %31, %32 : vector<8x4xf32>
    %34 = arith.mulf %33, %29 : vector<8x4xf32>
    %35 = math.exp %34 : vector<8x4xf32>
    %36 = tpu.iota {dimensions = array<i32: 2>} : vector<1x1x8xi32>
    %37 = arith.sitofp %36 : vector<1x1x8xi32> to vector<1x1x8xf32>
    %cst_21 = arith.constant 0.142857149 : f32
    %38 = vector.broadcast %cst_21 : f32 to vector<1x1x8xf32>
    %39 = arith.mulf %37, %38 : vector<1x1x8xf32>
    %cst_22 = arith.constant 1.000000e+00 : f32
    %40 = vector.broadcast %cst_22 : f32 to vector<1x1x8xf32>
    %41 = arith.addf %37, %40 : vector<1x1x8xf32>
    %cst_23 = arith.constant 7.000000e+00 : f32
    %42 = vector.broadcast %cst_23 : f32 to vector<1x1x8xf32>
    %43 = arith.minimumf %41, %42 : vector<1x1x8xf32>
    %cst_24 = arith.constant 0.142857149 : f32
    %44 = vector.broadcast %cst_24 : f32 to vector<1x1x8xf32>
    %45 = arith.mulf %43, %44 : vector<1x1x8xf32>
    %46 = vector.shape_cast %25 : vector<8x4xf32> to vector<8x4x1xf32>
    %cst_25 = arith.constant 0.000000e+00 : f32
    %47 = vector.broadcast %cst_25 : f32 to vector<8x4x1xf32>
    %48 = arith.subf %47, %46 : vector<8x4x1xf32>
    %49 = vector.broadcast %48 : vector<8x4x1xf32> to vector<8x4x8xf32>
    %50 = vector.broadcast %39 : vector<1x1x8xf32> to vector<8x4x8xf32>
    %51 = arith.mulf %49, %50 : vector<8x4x8xf32>
    %52 = math.exp %51 : vector<8x4x8xf32>
    %cst_26 = arith.constant 0.000000e+00 : f32
    %53 = vector.broadcast %cst_26 : f32 to vector<8x4x1xf32>
    %54 = arith.subf %53, %46 : vector<8x4x1xf32>
    %55 = vector.broadcast %54 : vector<8x4x1xf32> to vector<8x4x8xf32>
    %56 = vector.broadcast %45 : vector<1x1x8xf32> to vector<8x4x8xf32>
    %57 = arith.mulf %55, %56 : vector<8x4x8xf32>
    %58 = math.exp %57 : vector<8x4x8xf32>
    %c6_i32 = arith.constant 6 : i32
    %59 = vector.broadcast %c6_i32 : i32 to vector<1x1x8xi32>
    %60 = arith.cmpi eq, %36, %59 : vector<1x1x8xi32>
    %cst_27 = arith.constant 0.000000e+00 : f32
    %61 = vector.shape_cast %60 : vector<1x1x8xi1> to vector<1x1x8xi1>
    %62 = vector.broadcast %61 : vector<1x1x8xi1> to vector<8x4x8xi1>
    %63 = vector.broadcast %cst_27 : f32 to vector<8x4x8xf32>
    %64 = arith.select %62, %52, %63 : vector<8x4x8xi1>, vector<8x4x8xf32>
    %cst_28 = arith.constant dense<0.000000e+00> : vector<8x4xf32>
    %65 = vector.multi_reduction <add>, %64, %cst_28 [2] : vector<8x4x8xf32> to vector<8x4xf32>
    %66 = vector.shape_cast %65 : vector<8x4xf32> to vector<8x4x1xf32>
    %c7_i32 = arith.constant 7 : i32
    %67 = vector.broadcast %c7_i32 : i32 to vector<1x1x8xi32>
    %68 = arith.cmpi eq, %36, %67 : vector<1x1x8xi32>
    %69 = vector.shape_cast %68 : vector<1x1x8xi1> to vector<1x1x8xi1>
    %70 = vector.broadcast %69 : vector<1x1x8xi1> to vector<8x4x8xi1>
    %71 = vector.shape_cast %66 : vector<8x4x1xf32> to vector<8x4x1xf32>
    %72 = vector.broadcast %71 : vector<8x4x1xf32> to vector<8x4x8xf32>
    %73 = arith.select %70, %72, %52 : vector<8x4x8xi1>, vector<8x4x8xf32>
    %74 = arith.subf %58, %73 : vector<8x4x8xf32>
    %75 = arith.mulf %74, %74 : vector<8x4x8xf32>
    %cst_29 = arith.constant 1.000000e+00 : f32
    %76 = vector.broadcast %cst_29 : f32 to vector<8x4x8xf32>
    %77 = arith.divf %76, %75 : vector<8x4x8xf32>
    %78 = vector.shape_cast %35 : vector<8x4xf32> to vector<8x4x1xf32>
    %79 = vector.broadcast %78 : vector<8x4x1xf32> to vector<8x4x8xf32>
    %80 = arith.subf %79, %52 : vector<8x4x8xf32>
    %cst_30 = arith.constant 0.000000e+00 : f32
    %81 = vector.broadcast %cst_30 : f32 to vector<8x4x8xf32>
    %82 = arith.subf %81, %77 : vector<8x4x8xf32>
    %83 = arith.mulf %80, %80 : vector<8x4x8xf32>
    %84 = arith.mulf %82, %83 : vector<8x4x8xf32>
    %85 = math.exp %84 : vector<8x4x8xf32>
    %c0_31 = arith.constant 0 : index
    %c0_32 = arith.constant 0 : index
    %c0_33 = arith.constant 0 : index
    %86 = vector.load %arg0[%c0_31, %c0_32, %c0_33] : memref<8x4x8xf32, #tpu.memory_space<vmem>>, vector<8x4x8xf32>
    %87 = arith.mulf %86, %85 : vector<8x4x8xf32>
    %cst_34 = arith.constant dense<0.000000e+00> : vector<8x4xf32>
    %88 = vector.multi_reduction <add>, %87, %cst_34 [2] : vector<8x4x8xf32> to vector<8x4xf32>
    %cst_35 = arith.constant 1.000000e-01 : f32
    %89 = vector.broadcast %cst_35 : f32 to vector<8x4xf32>
    %90 = arith.mulf %88, %89 : vector<8x4xf32>
    %cst_36 = arith.constant dense<0.000000e+00> : vector<8x4xf32>
    %91 = vector.multi_reduction <add>, %85, %cst_36 [2] : vector<8x4x8xf32> to vector<8x4xf32>
    %92 = arith.divf %90, %91 : vector<8x4xf32>
    %93 = arith.mulf %92, %35 : vector<8x4xf32>
    %94 = arith.subf %1, %7 : vector<8x4xf32>
    %95 = arith.mulf %27, %94 : vector<8x4xf32>
    %cst_37 = arith.constant 8.000000e-01 : f32
    %96 = vector.broadcast %cst_37 : f32 to vector<8x4xf32>
    %97 = arith.mulf %96, %9 : vector<8x4xf32>
    %98 = arith.subf %95, %97 : vector<8x4xf32>
    %99 = arith.mulf %23, %98 : vector<8x4xf32>
    %100 = arith.subf %1, %5 : vector<8x4xf32>
    %101 = arith.mulf %100, %93 : vector<8x4xf32>
    %102 = arith.addf %99, %101 : vector<8x4xf32>
    %cst_38 = arith.constant 1.000000e-01 : f32
    %103 = vector.broadcast %cst_38 : f32 to vector<8x4xf32>
    %104 = arith.mulf %102, %103 : vector<8x4xf32>
    %cst_39 = arith.constant 6.400000e-01 : f32
    %105 = vector.broadcast %cst_39 : f32 to vector<8x4xf32>
    %106 = arith.divf %104, %105 : vector<8x4xf32>
    %107 = arith.addf %9, %106 : vector<8x4xf32>
    %cst_40 = arith.constant 1.000000e-01 : f32
    %108 = vector.broadcast %cst_40 : f32 to vector<8x4xf32>
    %109 = arith.mulf %107, %108 : vector<8x4xf32>
    %110 = arith.addf %7, %109 : vector<8x4xf32>
    %c0_41 = arith.constant 0 : index
    %c0_42 = arith.constant 0 : index
    %111 = vector.load %arg2[%c0_41, %c0_42] : memref<8x4xf32, #tpu.memory_space<vmem>>, vector<8x4xf32>
    tpu.vector_store %arg2[%c0_41, %c0_42], %110 {strides = array<i32>} : memref<8x4xf32, #tpu.memory_space<vmem>>, vector<8x4xf32>,
    return
  }
}

</mosaic_0001>

<bundles_post_ra>
// kernel: dmp_forward.1
= control target key start
LH: loop header
LB: loop body
LE: loop exit
PB: predicated region body
PF: predicated region fallthrough
CT: control target
= control target key end

     0   :  { %v41_v3 = vlaneseq  ;;  %vm171_vm2 = vcmask 60416   ;;  %vm574_vm4 = vcmask 1041409   ;;  %vm576_vm5 = vcmask 1042434   ;;  %s946_s1 = inlined_call_operand.vmem [shape: f32[6,8,4], index: 1, kind: input, shape index: {}]   ;;  %s947_s0 = inlined_call_operand.vmem [shape: f32[8,4,8], index: 0, kind: input, shape index: {}]   ;;  %s948_s2 = inlined_call_operand.vmem [shape: f32[8,4], index: 2, kind: output, shape index: {}]  }
   0x1   :  { %v603_v0 = vld [vmem:[%s946_s1 + $0x8] sm:$0xff]  ;;  %vm578_vm6 = vcmask 1043459   ;;  %vm580_vm7 = vcmask 1044484   ;;  %vm582_vm8 = vcmask 1045509   ;;  %vm584_vm9 = vcmask 1046534  }
   0x2   :  { %v23_v1 = vmin.f32 %v603_v0, 0.0  ;;  %vm22_vm0 = vcmp.gt.f32.partialorder %v603_v0, 0.0  ;;  %v715_v6 = vshrl.u32 %v41_v3, 7  ;;  %v607_v12 = vld [vmem:[%s946_s1 + $0x28] sm:$0xff]  ;;  %v753_v42 = vand.u32 127, %v41_v3 }
   0x3   :  { %v34_v16 = vmul.f32 0.1, %v607_v12  ;;  %vm586_vm10 = vcmask 1047559   ;;  %vm597_vm11 = vcmask 31744  }
   0x4   :  { %v24_v2 = vmul.f32 1.442695, %v23_v1  ;;  %v50_v10 = vsub.s32 0, %v715_v6  ;;  %v64_v11 = vsub.s32 2, %v715_v6  ;;  %v57_v14 = vsub.s32 1, %v715_v6 }
   0x5   :  { %v71_v15 = vsub.s32 3, %v715_v6  ;;  %v78_v20 = vsub.s32 4, %v715_v6  ;;  %v85_v24 = vsub.s32 5, %v715_v6  ;;  %v92_v26 = vsub.s32 6, %v715_v6 }
   0x6   :  { %612 = vpow2.f32 %v24_v2  ;;  %v99_v30 = vsub.s32 7, %v715_v6  ;;  %v43_v43 = vcvt.s32.f32 %v753_v42  ;;  %vm160_vm1 = vcmp.eq.s32.totalorder %v753_v42, 6 }
   0x7   :  { %vm196_vm3 = vcmp.eq.s32.totalorder %v753_v42, 7 }
   0x8   :  { %v45_v44 = vadd.f32 1.0, %v43_v43  ;;  %v44_v46 = vmul.f32 0.14285715, %v43_v43 }
   0xa   :  { %v46_v45 = vmin.f32 %v45_v44, 7.0 }
   0xc   :  { %v47_v47 = vmul.f32 0.14285715, %v46_v45 }
  0x13   :  { %v613_v4 = vpop.eup %612 }
  0x14   :  { %v608_v5 = vadd.f32 -1.0, %v613_v4 }
  0x16   :  { %v27_v7 = vsel %vm22_vm0, %v603_v0, %v608_v5 }
  0x17   :  { %v28_v8 = vmul.f32 10.0, %v27_v7 }
  0x19   :  { %v717_v9 = vadd.f32 2.0, %v28_v8 }
  0x1b   :  { %v31_v13 = vmul.f32 0.33333334, %v717_v9 }
  0x1d   :  { %v51_v17 = vrot.slane %v31_v13, %v50_v10  ;;  %v35_v18 = vsub.f32 0.0, %v31_v13  ;;  %v65_v19 = vrot.slane %v31_v13, %v64_v11  ;;  %v58_v22 = vrot.slane %v31_v13, %v57_v14 }
  0x1e   :  { %v72_v23 = vrot.slane %v31_v13, %v71_v15  ;;  %v79_v28 = vrot.slane %v31_v13, %v78_v20  ;;  %v86_v29 = vrot.slane %v31_v13, %v85_v24  ;;  %v93_v31 = vrot.slane %v31_v13, %v92_v26 }
  0x1f   :  { %53 = vbcast.lane.b32.xlu0 %v51_v17, 256  ;;  %v37_v21 = vmul.f32 1.25, %v35_v18  ;;  %67 = vbcast.lane.b32.xlu1 %v65_v19, 256  ;;  %v100_v32 = vrot.slane %v31_v13, %v99_v30 }
  0x21   :  { %v38_v25 = vmul.f32 %v37_v21, %v34_v16 }
  0x23   :  { %v39_v27 = vmul.f32 1.442695, %v38_v25  ;;  %60 = vbcast.lane.b32.xlu0 %v58_v22, 256  ;;  %74 = vbcast.lane.b32.xlu1 %v72_v23, 256 }
  0x25   :  { %614 = vpow2.f32 %v39_v27 }
  0x27   :  { %81 = vbcast.lane.b32.xlu0 %v79_v28, 256  ;;  %88 = vbcast.lane.b32.xlu1 %v86_v29, 256 }
  0x2b   :  { %95 = vbcast.lane.b32.xlu0 %v93_v31, 256  ;;  %102 = vbcast.lane.b32.xlu1 %v100_v32, 256 }
  0x32   :  { %v615_v33 = vpop.eup %614 }
  0x33   :  { %v731_v34 = vrot.slane %v615_v33, %v50_v10  ;;  %v733_v35 = vrot.slane %v615_v33, %v57_v14  ;;  %v736_v36 = vrot.slane %v615_v33, %v64_v11  ;;  %v739_v37 = vrot.slane %v615_v33, %v78_v20 }
  0x34   :  { %v741_v38 = vrot.slane %v615_v33, %v99_v30  ;;  %v744_v39 = vrot.slane %v615_v33, %v71_v15  ;;  %v748_v40 = vrot.slane %v615_v33, %v85_v24  ;;  %v751_v41 = vrot.slane %v615_v33, %v92_v26 }
  0x35   :  { %244 = vbcast.lane.b32.xlu1 %v731_v34, 256  ;;  %251 = vbcast.lane.b32.xlu0 %v733_v35, 256 }
  0x39   :  { %258 = vbcast.lane.b32.xlu1 %v736_v36, 256  ;;  %272 = vbcast.lane.b32.xlu0 %v739_v37, 256 }
  0x3d   :  { %265 = vbcast.lane.b32.xlu1 %v744_v39, 256 }
  0x41   :  { %279 = vbcast.lane.b32.xlu1 %v748_v40, 256 }
  0x91   :  { %v54_v48 = vpop.permute.xlu0 %53  ;;  %v68_v49 = vpop.permute.xlu1 %67 }
  0x92   :  { %v104_v50 = vsub.f32 0.0, %v54_v48  ;;  %v106_v51 = vsub.f32 0.0, %v68_v49 }
  0x94   :  { %v112_v52 = vmul.f32 %v104_v50, %v44_v46  ;;  %v756_v53 = vmul.f32 %v104_v50, %v47_v47  ;;  %v114_v54 = vmul.f32 %v106_v51, %v44_v46  ;;  %v758_v55 = vmul.f32 %v106_v51, %v47_v47 }
  0x95   :  { %v61_v56 = vpop.permute.xlu0 %60  ;;  %v75_v57 = vpop.permute.xlu1 %74 }
  0x96   :  { %v120_v58 = vmul.f32 1.442695, %v112_v52  ;;  %v124_v59 = vmul.f32 1.442695, %v114_v54  ;;  %v105_v60 = vsub.f32 0.0, %v61_v56  ;;  %v107_v61 = vsub.f32 0.0, %v75_v57 }
  0x98   :  { %616 = vpow2.f32 %v120_v58  ;;  %v113_v62 = vmul.f32 %v105_v60, %v44_v46  ;;  %v760_v63 = vmul.f32 %v105_v60, %v47_v47  ;;  %v115_v0 = vmul.f32 %v107_v61, %v44_v46 }
  0x99   :  { %v82_v1 = vpop.permute.xlu0 %81  ;;  %v89_v2 = vpop.permute.xlu1 %88  ;;  %618 = vpow2.f32 %v124_v59  ;;  %v762_v3 = vmul.f32 %v107_v61, %v47_v47 }
  0x9a   :  { %v108_v4 = vsub.f32 0.0, %v82_v1  ;;  %v109_v5 = vsub.f32 0.0, %v89_v2  ;;  %v122_v7 = vmul.f32 1.442695, %v113_v62  ;;  %v126_v8 = vmul.f32 1.442695, %v115_v0 }
  0x9b   :  { %v144_v62 = vmul.f32 1.442695, %v756_v53  ;;  %v148_v0 = vmul.f32 1.442695, %v758_v55 }
  0x9c   :  { %v116_v10 = vmul.f32 %v108_v4, %v44_v46  ;;  %v764_v11 = vmul.f32 %v108_v4, %v47_v47  ;;  %v117_v12 = vmul.f32 %v109_v5, %v44_v46  ;;  %620 = vpow2.f32 %v122_v7 }
  0x9d   :  { %v766_v13 = vmul.f32 %v109_v5, %v47_v47  ;;  %v96_v14 = vpop.permute.xlu0 %95  ;;  %v103_v15 = vpop.permute.xlu1 %102  ;;  %622 = vpow2.f32 %v126_v8 }
  0x9e   :  { %v128_v16 = vmul.f32 1.442695, %v116_v10  ;;  %v130_v17 = vmul.f32 1.442695, %v117_v12  ;;  %v110_v18 = vsub.f32 0.0, %v96_v14  ;;  %v111_v19 = vsub.f32 0.0, %v103_v15 }
  0xa0   :  { %624 = vpow2.f32 %v128_v16  ;;  %v118_v20 = vmul.f32 %v110_v18, %v44_v46  ;;  %v768_v21 = vmul.f32 %v110_v18, %v47_v47  ;;  %v119_v22 = vmul.f32 %v111_v19, %v44_v46 }
  0xa1   :  { %v770_v23 = vmul.f32 %v111_v19, %v47_v47  ;;  %626 = vpow2.f32 %v130_v17 }
  0xa2   :  { %v132_v24 = vmul.f32 1.442695, %v118_v20  ;;  %v134_v25 = vmul.f32 1.442695, %v119_v22  ;;  %v156_v53 = vmul.f32 1.442695, %v768_v21 }
  0xa3   :  { %v158_v55 = vmul.f32 1.442695, %v770_v23 }
  0xa4   :  { %628 = vpow2.f32 %v132_v24 }
  0xa5   :  { %v773_v26 = vpop.eup %616  ;;  %630 = vpow2.f32 %v134_v25 }
  0xa6   :  { %v163_v27 = vsel %vm160_vm1, %v773_v26, 0.0  ;;  %v778_v28 = vpop.eup %618  ;;  %632 = vpow2.f32 %v144_v62 }
  0xa7   :  { %v172_v29 = vsel %vm171_vm2, %v163_v27, 0.0  ;;  %v165_v30 = vsel %vm160_vm1, %v778_v28, 0.0  ;;  %v245_v61 = vpop.permute.xlu1 %244  ;;  %v834_v2 = vpop.permute.xlu0 %251  ;;  %634 = vpow2.f32 %v148_v0 }
  0xa8   :  { %173 = vadd.xlane.f32.xlu0 %v172_v29  ;;  %v178_v31 = vsel %vm171_vm2, %v165_v30, 0.0 }
  0xa9   :  { %v785_v32 = vpop.eup %620 }
  0xaa   :  { %v164_v33 = vsel %vm160_vm1, %v785_v32, 0.0  ;;  %v790_v43 = vpop.eup %622 }
  0xab   :  { %v175_v44 = vsel %vm171_vm2, %v164_v33, 0.0  ;;  %v166_v45 = vsel %vm160_vm1, %v790_v43, 0.0  ;;  %v832_v1 = vpop.permute.xlu1 %258 }
  0xac   :  { %179 = vadd.xlane.f32.xlu0 %v178_v31  ;;  %176 = vadd.xlane.f32.xlu1 %v175_v44  ;;  %v181_v47 = vsel %vm171_vm2, %v166_v45, 0.0 }
  0xad   :  { %v796_v46 = vpop.eup %624 }
  0xae   :  { %v167_v48 = vsel %vm160_vm1, %v796_v46, 0.0  ;;  %v802_v49 = vpop.eup %626 }
  0xaf   :  { %v184_v50 = vsel %vm171_vm2, %v167_v48, 0.0  ;;  %v168_v51 = vsel %vm160_vm1, %v802_v49, 0.0 }
  0xb0   :  { %182 = vadd.xlane.f32.xlu0 %v181_v47  ;;  %185 = vadd.xlane.f32.xlu1 %v184_v50  ;;  %v187_v54 = vsel %vm171_vm2, %v168_v51, 0.0 }
  0xb1   :  { %v808_v52 = vpop.eup %628 }
  0xb2   :  { %v169_v56 = vsel %vm160_vm1, %v808_v52, 0.0  ;;  %v814_v57 = vpop.eup %630 }
  0xb3   :  { %v190_v58 = vsel %vm171_vm2, %v169_v56, 0.0  ;;  %v170_v59 = vsel %vm160_vm1, %v814_v57, 0.0  ;;  %v295_v56 = vsub.f32 %v245_v61, %v773_v26 }
  0xb4   :  { %188 = vadd.xlane.f32.xlu0 %v187_v54  ;;  %191 = vadd.xlane.f32.xlu1 %v190_v58  ;;  %v193_v60 = vsel %vm171_vm2, %v170_v59, 0.0 }
  0xb8   :  { %194 = vadd.xlane.f32.xlu0 %v193_v60 }
  0xc5   :  { %293 = vbcast.lane.b32.xlu1 %v741_v38, 256 }
  0xc9   :  { %437 = vbcast.lane.b32.xlu1 %v731_v34, 256  ;;  %v146_v34 = vmul.f32 1.442695, %v760_v63 }
  0xcb   :  { %636 = vpow2.f32 %v146_v34 }
  0xcd   :  { %451 = vbcast.lane.b32.xlu1 %v736_v36, 256  ;;  %v150_v36 = vmul.f32 1.442695, %v762_v3  ;;  %v633_v3 = vpop.eup %632 }
  0xce   :  { %286 = vbcast.lane.b32.xlu0 %v751_v41, 256 }
  0xcf   :  { %638 = vpow2.f32 %v150_v36 }
  0xd1   :  { %458 = vbcast.lane.b32.xlu1 %v744_v39, 256  ;;  %v838_v39 = vpop.permute.xlu1 %265 }
  0xd2   :  { %444 = vbcast.lane.b32.xlu0 %v733_v35, 256  ;;  %v152_v35 = vmul.f32 1.442695, %v764_v11  ;;  %v635_v11 = vpop.eup %634 }
  0xd4   :  { %640 = vpow2.f32 %v152_v35  ;;  %v311_v35 = vmul.f32 %v295_v56, %v295_v56 }
  0xd5   :  { %472 = vbcast.lane.b32.xlu1 %v748_v40, 256  ;;  %v841_v40 = vpop.permute.xlu0 %272  ;;  %v846_v4 = vpop.permute.xlu1 %279 }
  0xd6   :  { %465 = vbcast.lane.b32.xlu0 %v739_v37, 256  ;;  %v154_v37 = vmul.f32 1.442695, %v766_v13 }
  0xd8   :  { %642 = vpow2.f32 %v154_v37  ;;  %v637_v14 = vpop.eup %636  ;;  %v297_v37 = vsub.f32 %v832_v1, %v778_v28 }
  0xd9   :  { %644 = vpow2.f32 %v156_v53 }
  0xda   :  { %646 = vpow2.f32 %v158_v55 }
  0xdc   :  { %v639_v20 = vpop.eup %638 }
  0xe1   :  { %v641_v24 = vpop.eup %640 }
  0xe5   :  { %v643_v33 = vpop.eup %642 }
  0xe6   :  { %v645_v48 = vpop.eup %644 }
  0xe7   :  { %v647_v60 = vpop.eup %646 }
 0x131   :  { %v174_v63 = vpop.xlane.xlu0 %173 }
 0x132   :  { %v199_v5 = vsel %vm196_vm3, %v174_v63, %v773_v26  ;;  %v296_v26 = vsub.f32 %v834_v2, %v785_v32 }
 0x133   :  { %v207_v7 = vsub.f32 %v633_v3, %v199_v5  ;;  %v313_v5 = vmul.f32 %v297_v37, %v297_v37 }
 0x135   :  { %v215_v8 = vmul.f32 %v207_v7, %v207_v7  ;;  %v180_v10 = vpop.xlane.xlu0 %179  ;;  %v177_v13 = vpop.xlane.xlu1 %176  ;;  %v298_v7 = vsub.f32 %v838_v39, %v790_v43 }
 0x136   :  { %v201_v12 = vsel %vm196_vm3, %v180_v10, %v778_v28  ;;  %v200_v16 = vsel %vm196_vm3, %v177_v13, %v785_v32 }
 0x137   :  { %648 = vrcp.f32 %v215_v8  ;;  %v209_v15 = vsub.f32 %v635_v11, %v201_v12  ;;  %v208_v17 = vsub.f32 %v637_v14, %v200_v16  ;;  %v312_v11 = vmul.f32 %v296_v26, %v296_v26 }
 0x138   :  { %v299_v12 = vsub.f32 %v841_v40, %v796_v46  ;;  %v300_v16 = vsub.f32 %v846_v4, %v802_v49 }
 0x139   :  { %v217_v18 = vmul.f32 %v209_v15, %v209_v15  ;;  %v183_v19 = vpop.xlane.xlu0 %182  ;;  %v216_v21 = vmul.f32 %v208_v17, %v208_v17  ;;  %v186_v23 = vpop.xlane.xlu1 %185  ;;  %v314_v15 = vmul.f32 %v298_v7, %v298_v7 }
 0x13a   :  { %v202_v22 = vsel %vm196_vm3, %v183_v19, %v790_v43  ;;  %v203_v27 = vsel %vm196_vm3, %v186_v23, %v796_v46  ;;  %v315_v43 = vmul.f32 %v299_v12, %v299_v12  ;;  %v346_v12 = vld [vmem:[%s947_s0 + $0xc] sm:$0xf] }
 0x13b   :  { %650 = vrcp.f32 %v217_v18  ;;  %v210_v25 = vsub.f32 %v639_v20, %v202_v22  ;;  %v211_v29 = vsub.f32 %v641_v24, %v203_v27  ;;  %v316_v24 = vmul.f32 %v300_v16, %v300_v16 }
 0x13c   :  { %652 = vrcp.f32 %v216_v21 }
 0x13d   :  { %v218_v30 = vmul.f32 %v210_v25, %v210_v25  ;;  %v189_v31 = vpop.xlane.xlu0 %188  ;;  %v219_v44 = vmul.f32 %v211_v29, %v211_v29  ;;  %v192_v47 = vpop.xlane.xlu1 %191 }
 0x13e   :  { %v204_v45 = vsel %vm196_vm3, %v189_v31, %v802_v49  ;;  %v205_v51 = vsel %vm196_vm3, %v192_v47, %v808_v52 }
 0x13f   :  { %654 = vrcp.f32 %v218_v30  ;;  %v212_v50 = vsub.f32 %v643_v33, %v204_v45  ;;  %v213_v54 = vsub.f32 %v645_v48, %v205_v51 }
 0x140   :  { %656 = vrcp.f32 %v219_v44 }
 0x141   :  { %v220_v58 = vmul.f32 %v212_v50, %v212_v50  ;;  %v195_v59 = vpop.xlane.xlu0 %194  ;;  %v221_v62 = vmul.f32 %v213_v54, %v213_v54  ;;  %v294_v20 = vpop.permute.xlu1 %293 }
 0x142   :  { %v206_v0 = vsel %vm196_vm3, %v195_v59, %v814_v57  ;;  %v302_v29 = vsub.f32 %v294_v20, %v814_v57 }
 0x143   :  { %658 = vrcp.f32 %v220_v58  ;;  %v214_v34 = vsub.f32 %v647_v60, %v206_v0 }
 0x144   :  { %v649_v36 = vpop.eup %648  ;;  %660 = vrcp.f32 %v221_v62  ;;  %v318_v47 = vmul.f32 %v302_v29, %v302_v29 }
 0x145   :  { %v303_v53 = vsub.f32 0.0, %v649_v36  ;;  %v222_v55 = vmul.f32 %v214_v34, %v214_v34  ;;  %v287_v13 = vpop.permute.xlu0 %286 }
 0x146   :  { %v301_v21 = vsub.f32 %v287_v13, %v808_v52 }
 0x147   :  { %v319_v61 = vmul.f32 %v311_v35, %v303_v53  ;;  %662 = vrcp.f32 %v222_v55  ;;  %v343_v35 = vld [vmem:[%s947_s0] sm:$0xf] }
 0x148   :  { %v651_v63 = vpop.eup %650  ;;  %v317_v30 = vmul.f32 %v301_v21, %v301_v21 }
 0x149   :  { %v653_v3 = vpop.eup %652  ;;  %v327_v8 = vmul.f32 1.442695, %v319_v61  ;;  %v305_v10 = vsub.f32 0.0, %v651_v63  ;;  %v344_v63 = vld [vmem:[%s947_s0 + $0x4] sm:$0xf] }
 0x14a   :  { %v304_v28 = vsub.f32 0.0, %v653_v3  ;;  %v345_v3 = vld [vmem:[%s947_s0 + $0x8] sm:$0xf] }
 0x14b   :  { %664 = vpow2.f32 %v327_v8  ;;  %v321_v1 = vmul.f32 %v313_v5, %v305_v10 }
 0x14c   :  { %v655_v14 = vpop.eup %654  ;;  %v320_v32 = vmul.f32 %v312_v11, %v304_v28  ;;  %v347_v28 = vld [vmem:[%s947_s0 + $0x10] sm:$0xf] }
 0x14d   :  { %v657_v2 = vpop.eup %656  ;;  %v331_v17 = vmul.f32 1.442695, %v321_v1  ;;  %v306_v18 = vsub.f32 0.0, %v655_v14 }
 0x14e   :  { %v329_v39 = vmul.f32 1.442695, %v320_v32  ;;  %v307_v19 = vsub.f32 0.0, %v657_v2  ;;  %v348_v2 = vld [vmem:[%s947_s0 + $0x14] sm:$0xf] }
 0x14f   :  { %666 = vpow2.f32 %v331_v17  ;;  %v322_v46 = vmul.f32 %v314_v15, %v306_v18  ;;  %v349_v15 = vld [vmem:[%s947_s0 + $0x18] sm:$0xf] }
 0x150   :  { %v659_v40 = vpop.eup %658  ;;  %668 = vpow2.f32 %v329_v39  ;;  %v323_v22 = vmul.f32 %v315_v43, %v307_v19  ;;  %v350_v39 = vld [vmem:[%s947_s0 + $0x1c] sm:$0xf] }
 0x151   :  { %v661_v23 = vpop.eup %660  ;;  %v333_v25 = vmul.f32 1.442695, %v322_v46  ;;  %v308_v27 = vsub.f32 0.0, %v659_v40  ;;  %v696_v40 = vmov 0  }
 0x152   :  { %v335_v49 = vmul.f32 1.442695, %v323_v22  ;;  %v309_v4 = vsub.f32 0.0, %v661_v23  ;;  %611 = vset.pattern.permute.xlu1 %v696_v40  ;;  %610 = vset.pattern.permute.xlu0 %v696_v40  ;;  %v438_v22 = vpop.permute.xlu1 %437  ;;  %v605_v40 = vld [vmem:[%s946_s1 + $0x18] sm:$0xff] }
 0x153   :  { %670 = vpow2.f32 %v333_v25  ;;  %v324_v31 = vmul.f32 %v316_v24, %v308_v27  ;;  %v445_v24 = vpop.permute.xlu0 %444 }
 0x154   :  { %v663_v33 = vpop.eup %662  ;;  %672 = vpow2.f32 %v335_v49  ;;  %v325_v44 = vmul.f32 %v317_v30, %v309_v4 }
 0x155   :  { %v337_v52 = vmul.f32 1.442695, %v324_v31  ;;  %v310_v45 = vsub.f32 0.0, %v663_v33 }
 0x156   :  { %v339_v48 = vmul.f32 1.442695, %v325_v44  ;;  %v452_v23 = vpop.permute.xlu1 %451 }
 0x157   :  { %674 = vpow2.f32 %v337_v52  ;;  %v326_v50 = vmul.f32 %v318_v47, %v310_v45  ;;  %v466_v27 = vpop.permute.xlu0 %465 }
 0x158   :  { %v665_v51 = vpop.eup %664  ;;  %676 = vpow2.f32 %v339_v48 }
 0x159   :  { %v341_v54 = vmul.f32 1.442695, %v326_v50  ;;  %v391_v56 = vsel %vm171_vm2, %v665_v51, 0.0  ;;  %v351_v61 = vmul.f32 %v665_v51, %v343_v35 }
 0x15a   :  { %392 = vadd.xlane.f32.xlu0 %v391_v56  ;;  %v459_v25 = vpop.permute.xlu1 %458 }
 0x15b   :  { %678 = vpow2.f32 %v341_v54  ;;  %v359_v10 = vsel %vm171_vm2, %v351_v61, 0.0 }
 0x15c   :  { %v667_v57 = vpop.eup %666 }
 0x15d   :  { %v669_v58 = vpop.eup %668  ;;  %v397_v59 = vsel %vm171_vm2, %v667_v57, 0.0  ;;  %v353_v11 = vmul.f32 %v667_v57, %v345_v3 }
 0x15e   :  { %398 = vadd.xlane.f32.xlu0 %v397_v59  ;;  %v394_v60 = vsel %vm171_vm2, %v669_v58, 0.0  ;;  %v352_v8 = vmul.f32 %v669_v58, %v344_v63  ;;  %v473_v49 = vpop.permute.xlu1 %472 }
 0x15f   :  { %395 = vadd.xlane.f32.xlu1 %v394_v60  ;;  %v365_v14 = vsel %vm171_vm2, %v353_v11, 0.0 }
 0x160   :  { %v671_v62 = vpop.eup %670  ;;  %v362_v1 = vsel %vm171_vm2, %v352_v8, 0.0 }
 0x161   :  { %v673_v0 = vpop.eup %672  ;;  %v400_v34 = vsel %vm171_vm2, %v671_v62, 0.0  ;;  %v354_v13 = vmul.f32 %v671_v62, %v346_v12 }
 0x162   :  { %401 = vadd.xlane.f32.xlu0 %v400_v34  ;;  %v403_v36 = vsel %vm171_vm2, %v673_v0, 0.0  ;;  %v355_v32 = vmul.f32 %v673_v0, %v347_v28 }
 0x163   :  { %404 = vadd.xlane.f32.xlu1 %v403_v36  ;;  %v368_v16 = vsel %vm171_vm2, %v354_v13, 0.0 }
 0x164   :  { %v675_v37 = vpop.eup %674  ;;  %v371_v18 = vsel %vm171_vm2, %v355_v32, 0.0 }
 0x165   :  { %v677_v53 = vpop.eup %676  ;;  %v406_v55 = vsel %vm171_vm2, %v675_v37, 0.0  ;;  %v356_v17 = vmul.f32 %v675_v37, %v348_v2 }
 0x166   :  { %407 = vadd.xlane.f32.xlu0 %v406_v55  ;;  %v409_v26 = vsel %vm171_vm2, %v677_v53, 0.0  ;;  %v357_v43 = vmul.f32 %v677_v53, %v349_v15 }
 0x167   :  { %410 = vadd.xlane.f32.xlu1 %v409_v26  ;;  %v374_v19 = vsel %vm171_vm2, %v356_v17, 0.0 }
 0x168   :  { %v679_v5 = vpop.eup %678  ;;  %v377_v21 = vsel %vm171_vm2, %v357_v43, 0.0 }
 0x169   :  { %v412_v7 = vsel %vm171_vm2, %v679_v5, 0.0  ;;  %v358_v20 = vmul.f32 %v679_v5, %v350_v39 }
 0x16a   :  { %413 = vadd.xlane.f32.xlu0 %v412_v7 }
 0x16b   :  { %360 = vadd.xlane.f32.xlu1 %v359_v10  ;;  %v380_v46 = vsel %vm171_vm2, %v358_v20, 0.0 }
 0x16e   :  { %363 = vadd.xlane.f32.xlu0 %v362_v1 }
 0x16f   :  { %366 = vadd.xlane.f32.xlu1 %v365_v14 }
 0x172   :  { %369 = vadd.xlane.f32.xlu0 %v368_v16 }
 0x173   :  { %372 = vadd.xlane.f32.xlu1 %v371_v18 }
 0x176   :  { %375 = vadd.xlane.f32.xlu0 %v374_v19  ;;  %v544_v19 = vsub.s32 %v753_v42, %v715_v6  ;;  %v606_v6 = vld [vmem:[%s946_s1 + $0x20] sm:$0xff] }
 0x177   :  { %378 = vadd.xlane.f32.xlu1 %v377_v21 }
 0x17a   :  { %381 = vadd.xlane.f32.xlu0 %v380_v46  ;;  %v11_v46 = vld [vmem:[%s946_s1] sm:$0xff] }
 0x188   :  { %486 = vbcast.lane.b32.xlu1 %v741_v38, 256 }
 0x190   :  { %479 = vbcast.lane.b32.xlu0 %v751_v41, 256 }
 0x1e3   :  { %v393_v29 = vpop.xlane.xlu0 %392 }
 0x1e4   :  { %680 = vrcp.f32 %v393_v29 }
 0x1e7   :  { %v399_v4 = vpop.xlane.xlu0 %398 }
 0x1e8   :  { %v396_v30 = vpop.xlane.xlu1 %395 }
 0x1e9   :  { %682 = vrcp.f32 %v396_v30 }
 0x1ea   :  { %684 = vrcp.f32 %v399_v4 }
 0x1eb   :  { %v402_v31 = vpop.xlane.xlu0 %401 }
 0x1ec   :  { %v405_v33 = vpop.xlane.xlu1 %404  ;;  %686 = vrcp.f32 %v402_v31 }
 0x1ed   :  { %688 = vrcp.f32 %v405_v33  ;;  %v506_v33 = vmul.f32 0.8, %v606_v6 }
 0x1ef   :  { %v408_v44 = vpop.xlane.xlu0 %407 }
 0x1f0   :  { %v411_v52 = vpop.xlane.xlu1 %410  ;;  %690 = vrcp.f32 %v408_v44 }
 0x1f1   :  { %v681_v47 = vpop.eup %680  ;;  %692 = vrcp.f32 %v411_v52 }
 0x1f3   :  { %v414_v38 = vpop.xlane.xlu0 %413 }
 0x1f4   :  { %v361_v41 = vpop.xlane.xlu1 %360  ;;  %694 = vrcp.f32 %v414_v38 }
 0x1f5   :  { %v383_v45 = vmul.f32 0.1, %v361_v41 }
 0x1f6   :  { %v683_v56 = vpop.eup %682 }
 0x1f7   :  { %v416_v48 = vmul.f32 %v681_v47, %v383_v45  ;;  %v364_v50 = vpop.xlane.xlu0 %363  ;;  %v685_v60 = vpop.eup %684  ;;  %v604_v47 = vld [vmem:[%s946_s1 + $0x10] sm:$0xff] }
 0x1f8   :  { %v384_v51 = vmul.f32 0.1, %v364_v50  ;;  %v367_v54 = vpop.xlane.xlu1 %366 }
 0x1f9   :  { %v385_v57 = vmul.f32 0.1, %v367_v54  ;;  %v496_v58 = vmul.f32 %v438_v22, %v416_v48  ;;  %v687_v37 = vpop.eup %686 }
 0x1fa   :  { %v418_v59 = vmul.f32 %v683_v56, %v384_v51  ;;  %v689_v26 = vpop.eup %688 }
 0x1fb   :  { %519 = vperm.xlu0 %610, %v496_v58   ;;  %v370_v62 = vpop.xlane.xlu0 %369  ;;  %v420_v0 = vmul.f32 %v685_v60, %v385_v57  ;;  %v509_v57 = vsub.f32 %v11_v46, %v604_v47 }
 0x1fc   :  { %v386_v34 = vmul.f32 0.1, %v370_v62  ;;  %v373_v36 = vpop.xlane.xlu1 %372  ;;  %v497_v35 = vmul.f32 %v445_v24, %v418_v59  ;;  %v504_v24 = vsub.f32 %v11_v46, %v605_v40 }
 0x1fd   :  { %v387_v53 = vmul.f32 0.1, %v373_v36  ;;  %v498_v8 = vmul.f32 %v452_v23, %v420_v0  ;;  %v691_v10 = vpop.eup %690  ;;  %v33_v23 = vmul.f32 0.25, %v717_v9 }
 0x1fe   :  { %v422_v55 = vmul.f32 %v687_v37, %v386_v34  ;;  %522 = vperm.xlu1 %611, %v497_v35   ;;  %v693_v1 = vpop.eup %692 }
 0x1ff   :  { %v376_v61 = vpop.xlane.xlu0 %375  ;;  %v424_v63 = vmul.f32 %v689_v26, %v387_v53  ;;  %v505_v31 = vmul.f32 %v504_v24, %v33_v23 }
 0x200   :  { %v388_v3 = vmul.f32 0.1, %v376_v61  ;;  %v379_v5 = vpop.xlane.xlu1 %378  ;;  %v499_v7 = vmul.f32 %v459_v25, %v422_v55 }
 0x201   :  { %v389_v12 = vmul.f32 0.1, %v379_v5  ;;  %v500_v32 = vmul.f32 %v466_v27, %v424_v63  ;;  %v695_v2 = vpop.eup %694  ;;  %v507_v50 = vsub.f32 %v505_v31, %v506_v33 }
 0x202   :  { %v426_v11 = vmul.f32 %v691_v10, %v388_v3  ;;  %528 = vperm.xlu0 %610, %v499_v7   ;;  %525 = vperm.xlu1 %611, %v498_v8  }
 0x203   :  { %v382_v28 = vpop.xlane.xlu0 %381  ;;  %v428_v16 = vmul.f32 %v693_v1, %v389_v12  ;;  %v508_v60 = vmul.f32 %v507_v50, %v717_v9 }
 0x204   :  { %v390_v13 = vmul.f32 0.1, %v382_v28  ;;  %v501_v14 = vmul.f32 %v473_v49, %v426_v11  ;;  %v487_v15 = vpop.permute.xlu1 %486 }
 0x206   :  { %534 = vperm.xlu0 %610, %v501_v14   ;;  %531 = vperm.xlu1 %611, %v500_v32   ;;  %v430_v17 = vmul.f32 %v695_v2, %v390_v13 }
 0x207   :  { %v480_v18 = vpop.permute.xlu0 %479 }
 0x208   :  { %v502_v43 = vmul.f32 %v480_v18, %v428_v16  ;;  %v503_v39 = vmul.f32 %v487_v15, %v430_v17 }
 0x20a   :  { %537 = vperm.xlu1 %611, %v502_v43   ;;  %540 = vperm.xlu0 %610, %v503_v39  }
 0x276   :  { %v520_v20 = vpop.permute.xlu0 %519 }
 0x277   :  { %v545_v25 = vrot.slane %v520_v20, %v544_v19 }
 0x279   :  { %v523_v21 = vpop.permute.xlu1 %522 }
 0x27a   :  { %v549_v22 = vrot.slane %v523_v21, %v544_v19 }
 0x27c   :  { %v575_v49 = vsel %vm574_vm4, %v549_v22, %v545_v25 }
 0x27d   :  { %v529_v27 = vpop.permute.xlu0 %528  ;;  %v526_v29 = vpop.permute.xlu1 %525 }
 0x27e   :  { %v553_v42 = vrot.slane %v526_v29, %v544_v19  ;;  %v557_v4 = vrot.slane %v529_v27, %v544_v19 }
 0x280   :  { %v577_v30 = vsel %vm576_vm5, %v553_v42, %v575_v49 }
 0x281   :  { %v535_v44 = vpop.permute.xlu0 %534  ;;  %v532_v52 = vpop.permute.xlu1 %531  ;;  %v579_v45 = vsel %vm578_vm6, %v557_v4, %v577_v30 }
 0x282   :  { %v561_v38 = vrot.slane %v532_v52, %v544_v19  ;;  %v565_v41 = vrot.slane %v535_v44, %v544_v19 }
 0x284   :  { %v581_v48 = vsel %vm580_vm7, %v561_v38, %v579_v45 }
 0x285   :  { %v541_v51 = vpop.permute.xlu0 %540  ;;  %v538_v54 = vpop.permute.xlu1 %537  ;;  %v583_v59 = vsel %vm582_vm8, %v565_v41, %v581_v48 }
 0x286   :  { %v573_v56 = vrot.slane %v541_v51, %v544_v19  ;;  %v569_v58 = vrot.slane %v538_v54, %v544_v19 }
 0x288   :  { %v585_v62 = vsel %vm584_vm9, %v569_v58, %v583_v59 }
 0x289   :  { %v587_v0 = vsel %vm586_vm10, %v573_v56, %v585_v62 }
 0x28a   :  { %v589_v34 = vmul.f32 %v587_v0, %v509_v57 }
 0x28c   :  { %v590_v36 = vadd.f32 %v589_v34, %v508_v60 }
 0x28e   :  { %v591_v35 = vmul.f32 0.1, %v590_v36 }
 0x290   :  { %v593_v37 = vmul.f32 1.5625, %v591_v35 }
 0x292   :  { %v594_v53 = vadd.f32 %v606_v6, %v593_v37 }
 0x294   :  { %v595_v55 = vmul.f32 0.1, %v594_v53 }
 0x296   :  { %v596_v26 = vadd.f32 %v605_v40, %v595_v55 }
 0x298   :  { %598 = vst.msk [vmem:[%s948_s2] sm:$0xff] %vm597_vm11, %v596_v26 }

</bundles_post_ra>
